<compile_context>
chip_gen: v5e
topology: v5e:2x2
jax: 0.10.0
libtpu: 0.0.40
codegen_flags: <defaults>
</compile_context>

<pallas_src>
import jax
import jax.numpy as jnp
from jax.experimental import pallas as pl
from jax.experimental.pallas import tpu as pltpu


_B_TILE = 2048   # row tile for the large-batch grid path (sweepable 2048-4096)


def reconstructor_kernel(x_ref, w1_ref, b1_ref, w2_ref, b2_ref, o_ref):
    # x: (Bt, D_in)  w1: (D_in, H)  b1: (1, H)  w2: (H, D_out)  b2: (1, D_out)
    h = jnp.dot(x_ref[...], w1_ref[...], preferred_element_type=jnp.float32)
    h = jnp.tanh(h + b1_ref[...])                       # VPU add + EUP tanh
    y = jnp.dot(h, w2_ref[...], preferred_element_type=jnp.float32)
    o_ref[...] = (y + b2_ref[...]).astype(o_ref.dtype)


def reconstructor_forward(x, w1, b1, w2, b2):
    """x: (B, D_in); w1: (D_in, H); b1: (1, H); w2: (H, D_out); b2: (1, D_out)."""
    B, D_in = x.shape
    H = w1.shape[1]
    D_out = w2.shape[1]

    cost = pl.CostEstimate(
        flops=2 * B * (D_in * H + H * D_out) + B * (H + D_out),
        transcendentals=B * H,
        bytes_accessed=4 * (B * D_in + B * D_out
                            + D_in * H + H + H * D_out + D_out),
    )

    if B <= _B_TILE:
        # Small-batch path: gridless, all operands resident in VMEM at their
        # natural (unpadded) shapes — no pipeline prologue, no padding HLOs.
        vmem = pl.BlockSpec(memory_space=pltpu.MemorySpace.VMEM)
        return pl.pallas_call(
            reconstructor_kernel,
            out_shape=jax.ShapeDtypeStruct((B, D_out), x.dtype),
            in_specs=[vmem, vmem, vmem, vmem, vmem],
            out_specs=vmem,
            cost_estimate=cost,
        )(x, w1, b1, w2, b2)

    # Large-batch path: ragged cdiv grid over rows ("parallel" -> megacore
    # sharding); weights/biases use constant index_maps so they are DMA'd once
    # and stay resident in VMEM across steps.  Last block may be partial:
    # invalid rows compute garbage but their output stores are dropped.
    grid = (pl.cdiv(B, _B_TILE),)
    return pl.pallas_call(
        reconstructor_kernel,
        out_shape=jax.ShapeDtypeStruct((B, D_out), x.dtype),
        grid=grid,
        in_specs=[
            pl.BlockSpec((_B_TILE, D_in), lambda i: (i, 0)),
            pl.BlockSpec((D_in, H), lambda i: (0, 0)),
            pl.BlockSpec((1, H), lambda i: (0, 0)),
            pl.BlockSpec((H, D_out), lambda i: (0, 0)),
            pl.BlockSpec((1, D_out), lambda i: (0, 0)),
        ],
        out_specs=pl.BlockSpec((_B_TILE, D_out), lambda i: (i, 0)),
        compiler_params=pltpu.CompilerParams(
            dimension_semantics=("parallel",),
            vmem_limit_bytes=32 * 1024 * 1024,
        ),
        cost_estimate=cost,
    )(x, w1, b1, w2, b2)


def init_linear(key, fan_in, fan_out, dtype=jnp.float32):
    # Deterministic init mimicking PyTorch nn.Linear default (uniform +/- 1/sqrt(fan_in)),
    # stored transposed (in, out) for row-major MXU matmuls.
    kw, kb = jax.random.split(key)
    bound = 1.0 / jnp.sqrt(jnp.float32(fan_in))
    w = jax.random.uniform(kw, (fan_in, fan_out), dtype, -bound, bound)
    b = jax.random.uniform(kb, (1, fan_out), dtype, -bound, bound)
    return w, b


if __name__ == "__main__":
    # Shapes consistent with the module's __init__:
    #   image_dim (embedding_size) = 32, discrete action_space.n = 8 -> D_in = 40
    #   hidden = 64, reconstruct_advice_size = 16 -> D_out = 32
    B = 2
    image_dim = 32
    action_shape = 8
    D_in = image_dim + action_shape
    H = 64
    reconstruct_advice_size = 16
    D_out = 2 * reconstruct_advice_size

    key = jax.random.PRNGKey(0)
    k_x, k_l1, k_l2, k_xbig = jax.random.split(key, 4)

    x = jax.random.normal(k_x, (B, D_in), jnp.float32)
    w1, b1 = init_linear(k_l1, D_in, H)
    w2, b2 = init_linear(k_l2, H, D_out)

    # Small-batch (single-block, gridless) path.
    out = jax.block_until_ready(reconstructor_forward(x, w1, b1, w2, b2))
    ref = jnp.tanh(x @ w1 + b1) @ w2 + b2
    assert out.shape == (B, D_out)
    assert jnp.allclose(out, ref, atol=1e-5, rtol=1e-5)

    # Batched (grid-tiled, parallel-over-B) path with a ragged final block.
    B_big = 5000   # cdiv(5000, 2048) = 3 grid steps, last block partial (904 rows)
    x_big = jax.random.normal(k_xbig, (B_big, D_in), jnp.float32)
    out_big = jax.block_until_ready(reconstructor_forward(x_big, w1, b1, w2, b2))
    ref_big = jnp.tanh(x_big @ w1 + b1) @ w2 + b2
    assert out_big.shape == (B_big, D_out)
    assert jnp.allclose(out_big, ref_big, atol=1e-5, rtol=1e-5)

    print("KERNEL_OK")
</pallas_src>

<mosaic_0001>
module attributes {stable_mosaic.version = 11 : i64} {
  func.func @reconstructor_kernel(%arg0: memref<2x40xf32, #tpu.memory_space<vmem>>, %arg1: memref<40x64xf32, #tpu.memory_space<vmem>>, %arg2: memref<1x64xf32, #tpu.memory_space<vmem>>, %arg3: memref<64x32xf32, #tpu.memory_space<vmem>>, %arg4: memref<1x32xf32, #tpu.memory_space<vmem>>, %arg5: memref<2x32xf32, #tpu.memory_space<vmem>>) attributes {dimension_semantics = [], scalar_prefetch = 0 : i64, scratch_operands = 0 : i64, tpu.core_type = #tpu.core_type<tc>} {
    %c0 = arith.constant 0 : index
    %c0_0 = arith.constant 0 : index
    %0 = vector.load %arg0[%c0, %c0_0] : memref<2x40xf32, #tpu.memory_space<vmem>>, vector<2x40xf32>
    %c0_1 = arith.constant 0 : index
    %c0_2 = arith.constant 0 : index
    %1 = vector.load %arg1[%c0_1, %c0_2] : memref<40x64xf32, #tpu.memory_space<vmem>>, vector<40x64xf32>
    %cst = arith.constant dense<0.000000e+00> : vector<2x64xf32>
    %2 = tpu.matmul %0, %1, %cst {dimension_numbers = #tpu.dot_dimension_numbers<[1], [0], [0], [1], [0, 0, 1, 1], [], []>} : vector<2x40xf32>, vector<40x64xf32>, vector<2x64xf32> -> vector<2x64xf32>
    %c0_3 = arith.constant 0 : index
    %c0_4 = arith.constant 0 : index
    %3 = vector.load %arg2[%c0_3, %c0_4] : memref<1x64xf32, #tpu.memory_space<vmem>>, vector<1x64xf32>
    %4 = vector.broadcast %3 : vector<1x64xf32> to vector<2x64xf32>
    %5 = arith.addf %2, %4 : vector<2x64xf32>
    %6 = math.tanh %5 : vector<2x64xf32>
    %c0_5 = arith.constant 0 : index
    %c0_6 = arith.constant 0 : index
    %7 = vector.load %arg3[%c0_5, %c0_6] : memref<64x32xf32, #tpu.memory_space<vmem>>, vector<64x32xf32>
    %cst_7 = arith.constant dense<0.000000e+00> : vector<2x32xf32>
    %8 = tpu.matmul %6, %7, %cst_7 {dimension_numbers = #tpu.dot_dimension_numbers<[1], [0], [0], [1], [0, 0, 1, 1], [], []>} : vector<2x64xf32>, vector<64x32xf32>, vector<2x32xf32> -> vector<2x32xf32>
    %c0_8 = arith.constant 0 : index
    %c0_9 = arith.constant 0 : index
    %9 = vector.load %arg4[%c0_8, %c0_9] : memref<1x32xf32, #tpu.memory_space<vmem>>, vector<1x32xf32>
    %10 = vector.broadcast %9 : vector<1x32xf32> to vector<2x32xf32>
    %11 = arith.addf %8, %10 : vector<2x32xf32>
    %c0_10 = arith.constant 0 : index
    %c0_11 = arith.constant 0 : index
    %12 = vector.load %arg5[%c0_10, %c0_11] : memref<2x32xf32, #tpu.memory_space<vmem>>, vector<2x32xf32>
    tpu.vector_store %arg5[%c0_10, %c0_11], %11 {strides = array<i32>} : memref<2x32xf32, #tpu.memory_space<vmem>>, vector<2x32xf32>,
    return
  }
}

</mosaic_0001>

<bundles_post_ra>
// kernel: tpu_custom_call.1
= control target key start
LH: loop header
LB: loop body
LE: loop exit
PB: predicated region body
PF: predicated region fallthrough
CT: control target
= control target key end

     0   :  { %s225_s0 = inlined_call_operand.vmem [shape: f32[2,40], index: 0, kind: input, shape index: {}]   ;;  %s226_s1 = inlined_call_operand.vmem [shape: f32[40,64], index: 1, kind: input, shape index: {}]   ;;  %s227_s2 = inlined_call_operand.vmem [shape: f32[1,64], index: 2, kind: input, shape index: {}]   ;;  %s228_s3 = inlined_call_operand.vmem [shape: f32[64,32], index: 3, kind: input, shape index: {}]   ;;  %s229_s4 = inlined_call_operand.vmem [shape: f32[1,32], index: 4, kind: input, shape index: {}]   ;;  %s230_s5 = inlined_call_operand.hbm [shape: f32[2,32], index: 5, kind: output, shape index: {}]  }
   0x1   :  { %v26_v0 = vld [vmem:[%s226_s1 + $0x20] sm:$0xff]  ;;  %v25_v1 = vld [vmem:[%s226_s1 + $0x18] sm:$0xff]  ;;  %v24_v2 = vld [vmem:[%s226_s1 + $0x10] sm:$0xff] }
   0x2   :  { %46 = vmatpush.msra.mxu0 %v26_v0  ;;  %v63_v3 = vld [vmem:[%s228_s3 + $0x38] sm:$0xff]  ;;  %v62_v4 = vld [vmem:[%s228_s3 + $0x30] sm:$0xff]  ;;  %v23_v5 = vld [vmem:[%s226_s1 + $0x8] sm:$0xff] }
   0x3   :  { %80 = vmatpush.msra.mxu1 %v63_v3  ;;  %v61_v6 = vld [vmem:[%s228_s3 + $0x28] sm:$0xff] }
   0x4   :  { %47 = vmatpush.msra.mxu0 %v25_v1 }
   0x5   :  { %10 = vsyncpa [#allocation3], 0  ;;  %81 = vmatpush.msra.mxu1 %v62_v4  ;;  %v22_v7 = vld [vmem:[%s226_s1] sm:$0xff]  ;;  %vm31_vm0 = vcmask 326656   ;;  %v59_v10 = vld [vmem:[%s228_s3 + $0x18] sm:$0xff]  ;;  %vm68_vm1 = vcmask 523264  }
   0x6   :  { %48 = vmatpush.msra.mxu0 %v24_v2  ;;  %v21_v8 = vld [vmem:[%s225_s0] sm:$0x3]  ;;  %v58_v11 = vld [vmem:[%s228_s3 + $0x10] sm:$0xff]  ;;  %v57_v12 = vld [vmem:[%s228_s3 + $0x8] sm:$0xff]  ;;  %s143_s23 = smov [#allocation2]   ;;  %s101_s26 = sshll.u32 %s230_s5, 4  ;;  %s102_s26 = int_to_ptr.hbm [resolvable:$true] %s101_s26 }
   0x7   :  { %82 = vmatpush.msra.mxu1 %v61_v6  ;;  %v60_v9 = vld [vmem:[%s228_s3 + $0x20] sm:$0xff]  ;;  %s99_s24 = sshll.u32 %s143_s23, 4  ;;  %vm92_vm2 = vcmask 254976   ;;  %s100_s24 = int_to_ptr.vmem [resolvable:$true] %s99_s24 }
   0x8   :  { %49 = vmatpush.msra.mxu0 %v23_v5  ;;  %v56_v13 = vld [vmem:[%s228_s3] sm:$0xff] }
   0x9   :  { %83 = vmatpush.msra.mxu1 %v60_v9  ;;  %v113_v14 = vld [vmem:[%s227_s2] ss:$0 sm:$0xff] }
   0xa   :  { %50 = vmatpush.msra.mxu0 %v22_v7  ;;  %v114_v18 = vld [vmem:[%s229_s4] ss:$0 sm:$0xff] }
   0xb   :  { %110 = vmatmul.msk.f32.vlgmr.msra.gmra.mxu0 %vm31_vm0, %v21_v8  ;;  %84 = vmatpush.msra.mxu1 %v59_v10 }
   0xd   :  { %85 = vmatpush.msra.mxu1 %v58_v11 }
   0xf   :  { %86 = vmatpush.msra.mxu1 %v57_v12 }
  0x11   :  { %87 = vmatpush.msra.mxu1 %v56_v13 }
  0x88   :  { %v52_v15 = vpop.f32.mrf.mxu0 }
  0x89   :  { %v53_v16 = vadd.f32 %v113_v14, %v52_v15 }
  0x8b   :  { %115 = vtanh.f32 %v53_v16 }
  0x91   :  { %v116_v17 = vpop.eup %115 }
  0x92   :  { %111 = vmatmul.msk.f32.vlgmr.msra.gmra.mxu1 %vm68_vm1, %v116_v17 }
 0x10f   :  { %v89_v19 = vpop.f32.mrf.mxu1 }
 0x110   :  { %v90_v20 = vadd.f32 %v114_v18, %v89_v19 }
 0x112   :  { %93 = vst.msk [vmem:[#allocation2] sm:$0x3] %vm92_vm2, %v90_v20 }
 0x113   :  { %104 = dma.vmem_to_hbm [thread:$0]  %s100_s24, 32, %s102_s26, [#allocation3]  }
 0x114   :  { %141 = dma.done.wait [#allocation3], 32  }
 0x115   :  { %142 = vsyncadd [#allocation3], 4294967264 }
 0x116   :  { %109 = vsyncpa [#allocation3], 1 }

</bundles_post_ra>
